<compile_context>
chip_gen: v7x
topology: tpu7x:2x2x1
jax: 0.10.0
libtpu: 0.0.40
codegen_flags: <defaults>
</compile_context>

<pallas_src>
import math
from typing import NamedTuple, Optional, Union

import jax
import jax.numpy as jnp
from jax.experimental import pallas as pl
from jax.experimental.pallas import tpu as pltpu


def _round_up(x, m):
    return ((x + m - 1) // m) * m


def _pick_tile(extent, align, cap):
    """Pick a tile size for one dimension.

    If the align-rounded extent fits under `cap`, use it directly (single
    block, minimal padding).  Otherwise scan power-of-two candidates from
    `cap` down to `align` and pick the one that minimizes total padding,
    preferring larger tiles on ties (less operand re-streaming)."""
    rounded = _round_up(extent, align)
    if rounded <= cap:
        return rounded
    best_c, best_pad = cap, _round_up(extent, cap)
    c = cap // 2
    while c >= align:
        padded = _round_up(extent, c)
        if padded < best_pad:
            best_c, best_pad = c, padded
        c //= 2
    return best_c


def _vmem_estimate(tm, tn, tk, w_bytes, out_bytes, has_bias):
    est = 2 * (tm * tk * 2)            # x tile (bf16), double-buffered
    est += 2 * (tk * tn * w_bytes)     # weight tile, double-buffered
    est += tm * tn * 4                 # f32 accumulator scratch
    est += 2 * (tm * tn * out_bytes)   # output tile, double-buffered
    if has_bias:
        est += 2 * (tn * 4)            # bias tile (f32), double-buffered
    return est


class PreparedBinaryWeight(NamedTuple):
    """Sign-binarized, transposed, padded weight ready for the kernel."""
    w_t: jax.Array       # (Kp, Np) bf16, = pad(sign(W_f32).T)
    out_features: int
    in_features: int
    tn: int
    tk: int


def prepare_binary_weight(weight, *, tn=None, tk=None,
                          weight_dtype=jnp.bfloat16) -> PreparedBinaryWeight:
    """Binarize + transpose + pad the weight once (cacheable at init time).

    sign() is computed on the original (f32) weight so semantics match
    torch.sign exactly; {-1, 0, +1} are exact in bf16.
    """
    out_features, in_features = weight.shape
    tn = tn or _pick_tile(out_features, 128, 1024)   # lane-dense output tile
    tk = tk or _pick_tile(in_features, 128, 1024)    # lane-aligned contraction
    Np = _round_up(out_features, tn)
    Kp = _round_up(in_features, tk)
    w_sign = jnp.sign(weight).astype(weight_dtype)
    w_t = jnp.pad(w_sign.T, ((0, Kp - in_features), (0, Np - out_features)))
    return PreparedBinaryWeight(w_t, out_features, in_features, tn, tk)


def _binary_linear_kernel_bias(x_ref, w_ref, b_ref, o_ref, acc_ref):
    """acc += x_tile @ w_tile (weight already binarized); bias+store on last k.

    x_ref : (tm, tk)  bf16 input tile
    w_ref : (tk, tn)  bf16 pre-binarized, pre-transposed weight tile
    b_ref : (1, tn)   f32 bias tile
    o_ref : (tm, tn)  output tile
    acc_ref: (tm, tn) f32 accumulator scratch (lives across the k axis)
    """
    k = pl.program_id(2)

    @pl.when(k == 0)
    def _():
        acc_ref[...] = jnp.zeros_like(acc_ref)

    acc_ref[...] += jnp.dot(x_ref[...], w_ref[...],
                            preferred_element_type=jnp.float32)

    @pl.when(k == pl.num_programs(2) - 1)
    def _():
        o_ref[...] = (acc_ref[...] + b_ref[...]).astype(o_ref.dtype)


def _binary_linear_kernel_nobias(x_ref, w_ref, o_ref, acc_ref):
    """No-bias variant: no zeros array, no extra DMA, no per-tile add."""
    k = pl.program_id(2)

    @pl.when(k == 0)
    def _():
        acc_ref[...] = jnp.zeros_like(acc_ref)

    acc_ref[...] += jnp.dot(x_ref[...], w_ref[...],
                            preferred_element_type=jnp.float32)

    @pl.when(k == pl.num_programs(2) - 1)
    def _():
        o_ref[...] = acc_ref[...].astype(o_ref.dtype)


def binary_linear(x, weight, bias=None, *, tm=None, tn=None, tk=None,
                  out_dtype=None):
    """Pallas implementation of BinaryLinear.forward.

    x      : (..., in_features)
    weight : (out_features, in_features) raw parameter, OR a cached
             PreparedBinaryWeight (recommended: prepare once at init time).
    bias   : (out_features,) or None
    out_dtype : output dtype (default x.dtype; pass jnp.bfloat16 to halve
                output HBM writeback).
    """
    if isinstance(weight, PreparedBinaryWeight):
        prep = weight
    else:
        prep = prepare_binary_weight(weight, tn=tn, tk=tk)

    out_features, in_features = prep.out_features, prep.in_features
    tn, tk = prep.tn, prep.tk
    Kp, Np = prep.w_t.shape

    lead_shape = x.shape[:-1]
    x2 = x.reshape(-1, in_features)
    M, K = x2.shape
    out_dtype = out_dtype or x.dtype
    out_bytes = jnp.dtype(out_dtype).itemsize

    # M tile: sublane-aligned (bf16 packs 16), chosen to minimize padding
    # waste; capped at 512.
    tm = tm or _pick_tile(M, 16, 512)

    # VMEM budget check (double-buffered inputs/output + f32 acc).  Worst case
    # with the default caps is ~12 MiB, which fits every generation's scoped
    # default, but shrink defensively if a caller passes huge tiles.
    budget = 24 << 20
    while (_vmem_estimate(tm, tn, tk, 2, out_bytes, bias is not None) > budget
           and (tk > 128 or tn > 128 or tm > 16)):
        if tk > 128:
            tk //= 2
        elif tn > 128:
            tn //= 2
        else:
            tm = max(16, tm // 2)
        # Tile changes along K/N require re-padding the weight.
        Np = _round_up(out_features, tn)
        Kp = _round_up(in_features, tk)
        prep = PreparedBinaryWeight(
            prep.w_t[:Kp, :Np] if prep.w_t.shape >= (Kp, Np) else prep.w_t,
            out_features, in_features, tn, tk)
    est = _vmem_estimate(tm, tn, tk, 2, out_bytes, bias is not None)

    Mp = _round_up(M, tm)
    # Zero-padded K columns contribute 0 to the accumulator; padded N columns
    # are sliced off below.
    x_p = jnp.pad(x2.astype(jnp.bfloat16), ((0, Mp - M), (0, Kp - K)))
    w_t = prep.w_t

    grid = (Mp // tm, Np // tn, Kp // tk)
    x_spec = pl.BlockSpec((tm, tk), lambda i, j, k: (i, k))
    w_spec = pl.BlockSpec((tk, tn), lambda i, j, k: (k, j))
    out_spec = pl.BlockSpec((tm, tn), lambda i, j, k: (i, j))

    compiler_params = pltpu.CompilerParams(
        dimension_semantics=("parallel", "parallel", "arbitrary"),
        # Explicit limit so the enlarged tiles keep 2-deep pipelining on v5e
        # (16 MiB scoped default) while staying well inside v7x's 64 MiB VMEM.
        vmem_limit_bytes=int(min(max(est + (4 << 20), 16 << 20), 48 << 20)),
    )
    bias_bytes = Np * 4 if bias is not None else 0
    cost = pl.CostEstimate(
        flops=2 * Mp * Np * Kp,
        transcendentals=0,
        bytes_accessed=Mp * Kp * 2 + Kp * Np * 2 + Mp * Np * out_bytes
        + bias_bytes,
    )

    if bias is not None:
        b_p = jnp.pad(bias.astype(jnp.float32),
                      (0, Np - out_features)).reshape(1, Np)
        out = pl.pallas_call(
            _binary_linear_kernel_bias,
            out_shape=jax.ShapeDtypeStruct((Mp, Np), out_dtype),
            grid_spec=pltpu.PrefetchScalarGridSpec(
                num_scalar_prefetch=0,
                grid=grid,
                in_specs=[x_spec, w_spec,
                          pl.BlockSpec((1, tn), lambda i, j, k: (0, j))],
                out_specs=out_spec,
                scratch_shapes=[pltpu.VMEM((tm, tn), jnp.float32)],
            ),
            compiler_params=compiler_params,
            cost_estimate=cost,
        )(x_p, w_t, b_p)
    else:
        out = pl.pallas_call(
            _binary_linear_kernel_nobias,
            out_shape=jax.ShapeDtypeStruct((Mp, Np), out_dtype),
            grid_spec=pltpu.PrefetchScalarGridSpec(
                num_scalar_prefetch=0,
                grid=grid,
                in_specs=[x_spec, w_spec],
                out_specs=out_spec,
                scratch_shapes=[pltpu.VMEM((tm, tn), jnp.float32)],
            ),
            compiler_params=compiler_params,
            cost_estimate=cost,
        )(x_p, w_t)

    return out[:M, :out_features].reshape(*lead_shape, out_features)


def init_binary_linear_params(key, in_features, out_features, bias=True):
    """Deterministic re-implementation of BinaryLinear.reset_parameters().

    kaiming_uniform_(weight, a=sqrt(5)) -> Uniform(-1/sqrt(fan_in), 1/sqrt(fan_in))
    bias -> Uniform(-1/sqrt(fan_in), 1/sqrt(fan_in))
    """
    kw, kb = jax.random.split(key)
    fan_in = in_features
    bound = 1.0 / math.sqrt(fan_in)
    weight = jax.random.uniform(
        kw, (out_features, in_features), minval=-bound, maxval=bound,
        dtype=jnp.float32)
    b = None
    if bias:
        b = jax.random.uniform(
            kb, (out_features,), minval=-bound, maxval=bound,
            dtype=jnp.float32)
    return weight, b


if __name__ == "__main__":
    key = jax.random.PRNGKey(0)
    k_x, k_p = jax.random.split(key)

    batch = 8
    in_features = 32
    out_features = 16

    x = jax.random.normal(k_x, (batch, in_features), dtype=jnp.float32)
    weight, bias = init_binary_linear_params(
        k_p, in_features, out_features, bias=True)

    # Hot path with the raw weight (prep fused into the call).
    out = jax.block_until_ready(binary_linear(x, weight, bias))
    out_nb = jax.block_until_ready(binary_linear(x, weight, None))
    assert out.shape == (batch, out_features)
    assert out_nb.shape == (batch, out_features)

    # Cached pre-binarized weight path (recommended for repeated forwards).
    prep = prepare_binary_weight(weight)
    out_prep = jax.block_until_ready(binary_linear(x, prep, bias))
    assert jnp.array_equal(out, out_prep)

    # Leading-dims reshape path.
    x3 = x.reshape(2, 4, in_features)
    out3 = jax.block_until_ready(binary_linear(x3, prep, bias))
    assert out3.shape == (2, 4, out_features)
    assert jnp.allclose(out3.reshape(batch, out_features), out)

    # Strict reference on the same bf16-rounded activations; sign(W) is taken
    # on f32 (exact torch.sign semantics) and is exact in bf16.
    x_bf = x.astype(jnp.bfloat16).astype(jnp.float32)
    w_sgn = jnp.sign(weight)
    ref = x_bf @ w_sgn.T + bias
    ref_nb = x_bf @ w_sgn.T
    assert jnp.allclose(out, ref, atol=1e-4, rtol=1e-4)
    assert jnp.allclose(out_nb, ref_nb, atol=1e-4, rtol=1e-4)

    # Loose check against the pure-f32 PyTorch-semantics reference
    # (only activation bf16 rounding differs).
    ref_f32 = x @ jnp.sign(weight).T + bias
    assert jnp.allclose(out, ref_f32, atol=1e-1, rtol=2e-2)

    print("KERNEL_OK")
</pallas_src>

<mosaic_0001>
module attributes {stable_mosaic.version = 11 : i64} {
  func.func @_binary_linear_kernel_bias(%arg0: i32, %arg1: i32, %arg2: i32, %arg3: memref<16x128xbf16, #tpu.memory_space<vmem>>, %arg4: memref<128x128xbf16, #tpu.memory_space<vmem>>, %arg5: memref<1x128xf32, #tpu.memory_space<vmem>>, %arg6: memref<16x128xf32, #tpu.memory_space<vmem>>, %arg7: memref<16x128xf32, #tpu.memory_space<vmem>>) attributes {dimension_semantics = [#tpu.dimension_semantics<parallel>, #tpu.dimension_semantics<parallel>, #tpu.dimension_semantics<arbitrary>], iteration_bounds = array<i64: 1, 1, 1>, scalar_prefetch = 0 : i64, scratch_operands = 1 : i64, tpu.core_type = #tpu.core_type<tc>, window_params = [{transform_indices = @transform_0, window_bounds = array<i64: 16, 128>}, {transform_indices = @transform_1, window_bounds = array<i64: 128, 128>}, {transform_indices = @transform_2, window_bounds = array<i64: 1, 128>}, {transform_indices = @transform_3, window_bounds = array<i64: 16, 128>}]} {
    %c0_i32 = arith.constant 0 : i32
    %0 = arith.cmpi eq, %arg2, %c0_i32 : i32
    %1 = arith.extui %0 : i1 to i32
    %c0_i32_0 = arith.constant 0 : i32
    %2 = arith.cmpi ne, %1, %c0_i32_0 : i32
    scf.if %2 {
      %cst_10 = arith.constant 0.000000e+00 : f32
      %12 = vector.broadcast %cst_10 : f32 to vector<16x128xf32>
      %c0_11 = arith.constant 0 : index
      %c0_12 = arith.constant 0 : index
      %13 = vector.load %arg7[%c0_11, %c0_12] : memref<16x128xf32, #tpu.memory_space<vmem>>, vector<16x128xf32>
      tpu.vector_store %arg7[%c0_11, %c0_12], %12 {strides = array<i32>} : memref<16x128xf32, #tpu.memory_space<vmem>>, vector<16x128xf32>,
    } else {
    }
    %c0 = arith.constant 0 : index
    %c0_1 = arith.constant 0 : index
    %3 = vector.load %arg7[%c0, %c0_1] : memref<16x128xf32, #tpu.memory_space<vmem>>, vector<16x128xf32>
    %c0_2 = arith.constant 0 : index
    %c0_3 = arith.constant 0 : index
    %4 = vector.load %arg3[%c0_2, %c0_3] : memref<16x128xbf16, #tpu.memory_space<vmem>>, vector<16x128xbf16>
    %c0_4 = arith.constant 0 : index
    %c0_5 = arith.constant 0 : index
    %5 = vector.load %arg4[%c0_4, %c0_5] : memref<128x128xbf16, #tpu.memory_space<vmem>>, vector<128x128xbf16>
    %cst = arith.constant dense<0.000000e+00> : vector<16x128xf32>
    %6 = tpu.matmul %4, %5, %cst {dimension_numbers = #tpu.dot_dimension_numbers<[1], [0], [0], [1], [0, 0, 1, 1], [], []>} : vector<16x128xbf16>, vector<128x128xbf16>, vector<16x128xf32> -> vector<16x128xf32>
    %7 = arith.addf %3, %6 : vector<16x128xf32>
    %c0_6 = arith.constant 0 : index
    %c0_7 = arith.constant 0 : index
    %8 = vector.load %arg7[%c0_6, %c0_7] : memref<16x128xf32, #tpu.memory_space<vmem>>, vector<16x128xf32>
    tpu.vector_store %arg7[%c0_6, %c0_7], %7 {strides = array<i32>} : memref<16x128xf32, #tpu.memory_space<vmem>>, vector<16x128xf32>,
    %c0_i32_8 = arith.constant 0 : i32
    %9 = arith.cmpi eq, %arg2, %c0_i32_8 : i32
    %10 = arith.extui %9 : i1 to i32
    %c0_i32_9 = arith.constant 0 : i32
    %11 = arith.cmpi ne, %10, %c0_i32_9 : i32
    scf.if %11 {
      %c0_10 = arith.constant 0 : index
      %c0_11 = arith.constant 0 : index
      %12 = vector.load %arg7[%c0_10, %c0_11] : memref<16x128xf32, #tpu.memory_space<vmem>>, vector<16x128xf32>
      %c0_12 = arith.constant 0 : index
      %c0_13 = arith.constant 0 : index
      %13 = vector.load %arg5[%c0_12, %c0_13] : memref<1x128xf32, #tpu.memory_space<vmem>>, vector<1x128xf32>
      %14 = vector.broadcast %13 : vector<1x128xf32> to vector<16x128xf32>
      %15 = arith.addf %12, %14 : vector<16x128xf32>
      %c0_14 = arith.constant 0 : index
      %c0_15 = arith.constant 0 : index
      %16 = vector.load %arg6[%c0_14, %c0_15] : memref<16x128xf32, #tpu.memory_space<vmem>>, vector<16x128xf32>
      tpu.vector_store %arg6[%c0_14, %c0_15], %15 {strides = array<i32>} : memref<16x128xf32, #tpu.memory_space<vmem>>, vector<16x128xf32>,
    } else {
    }
    return
  }
  func.func @transform_0(%arg0: i32, %arg1: i32, %arg2: i32) -> (i32, i32) {
    %c0_i32 = arith.constant 0 : i32
    return %arg0, %arg2 : i32, i32
  }
  func.func @transform_1(%arg0: i32, %arg1: i32, %arg2: i32) -> (i32, i32) {
    %c0_i32 = arith.constant 0 : i32
    return %arg2, %arg1 : i32, i32
  }
  func.func @transform_2(%arg0: i32, %arg1: i32, %arg2: i32) -> (i32, i32) {
    %c0_i32 = arith.constant 0 : i32
    %c0_i32_0 = arith.constant 0 : i32
    return %c0_i32, %arg1 : i32, i32
  }
  func.func @transform_3(%arg0: i32, %arg1: i32, %arg2: i32) -> (i32, i32) {
    %c0_i32 = arith.constant 0 : i32
    return %arg0, %arg1 : i32, i32
  }
}

</mosaic_0001>

<bundles_post_ra>
// kernel: tpu_custom_call.1
= control target key start
LH: loop header
LB: loop body
LE: loop exit
PB: predicated region body
PF: predicated region fallthrough
CT: control target
= control target key end

     0   :  { %8 = vsyncpa [#allocation4], 0  ;;  %s400_s0 = inlined_call_operand.hbm [shape: bf16[16,128], index: 0, kind: input, shape index: {}]   ;;  %s401_s1 = inlined_call_operand.hbm [shape: bf16[128,128], index: 1, kind: input, shape index: {}]   ;;  %s402_s2 = inlined_call_operand.vmem [shape: f32[1,128], index: 2, kind: input, shape index: {}]   ;;  %s403_s3 = inlined_call_operand.hbm [shape: f32[16,128], index: 3, kind: output, shape index: {}]  }
   0x1   :  { %9 = vsyncpa [#allocation7], 0 }
   0x2   :  { %10 = vsyncpa [#allocation5], 0  ;;  %s332_s12 = smov [#allocation3]   ;;  %s260_s16 = scalar_lea.hbm %s400_s0, 128 }
   0x3   :  { %s16_s13 = sshll.u32 %s332_s12, 4  ;;  %p261_p0 = scmp.ne.s32.totalorder %s400_s0, %s260_s16  ;;  %s17_s13 = int_to_ptr.vmem [resolvable:$true] %s16_s13 }
   0x4   :  { %p264_p1 = scmp.lt.u32.totalorder %s260_s16, %s400_s0 }
   0x6   :  { %p266_p2 = pnand %p264_p1, %p261_p0 }
   0x8   :  { %269 = shalt.err (!%p266_p2)
}
   0x9   :  { %s270_s21 = scalar_lea.vmem %s17_s13, 128  ;;  %p275_p4 = scmp.lt.s32.totalorder %s17_s13, %s17_s13 }
   0xa   :  { %p271_p3 = scmp.ne.s32.totalorder %s17_s13, %s270_s21  ;;  %p276_p5 = scmp.lt.s32.totalorder %s270_s21, %s270_s21 }
   0xc   :  { %p277_p6 = por %p276_p5, %p275_p4 }
   0xe   :  { %p278_p7 = pnand %p277_p6, %p271_p3 }
  0x10   :  { %281 = shalt.err (!%p278_p7)
}
  0x11   :  { %s333_s22 = smov 64   ;;  %s334_s23 = smov 4  }
  0x12   :  { %22 = dma.hbm_to_vmem [thread:$0]  %s400_s0, 128, %s17_s13, [#allocation4], %s333_s22, %s333_s22, %s334_s23  }
  0x13   :  { %s335_s26 = smov [#allocation6]   ;;  %s282_s30 = scalar_lea.hbm %s401_s1, 1024 }
  0x14   :  { %s28_s27 = sshll.u32 %s335_s26, 4  ;;  %p283_p8 = scmp.ne.s32.totalorder %s401_s1, %s282_s30  ;;  %s29_s27 = int_to_ptr.vmem [resolvable:$true] %s28_s27 }
  0x15   :  { %p286_p9 = scmp.lt.u32.totalorder %s282_s30, %s401_s1 }
  0x17   :  { %p288_p10 = pnand %p286_p9, %p283_p8 }
  0x19   :  { %291 = shalt.err (!%p288_p10)
}
  0x1a   :  { %s292_s8 = scalar_lea.vmem %s29_s27, 1024  ;;  %p297_p12 = scmp.lt.s32.totalorder %s29_s27, %s29_s27 }
  0x1b   :  { %p293_p11 = scmp.ne.s32.totalorder %s29_s27, %s292_s8  ;;  %p298_p13 = scmp.lt.s32.totalorder %s292_s8, %s292_s8 }
  0x1d   :  { %p299_p0 = por %p298_p13, %p297_p12 }
  0x1f   :  { %p300_p1 = pnand %p299_p0, %p293_p11 }
  0x21   :  { %303 = shalt.err (!%p300_p1)
}
  0x22   :  { %34 = dma.hbm_to_vmem [thread:$0]  %s401_s1, 1024, %s29_s27, [#allocation7], %s333_s22, %s333_s22, %s334_s23  }
  0x23   :  { %326 = dma.done.wait [#allocation4], 128  }
  0x24   :  { %327 = vsyncadd [#allocation4], 4294967168 }
  0x25   :  { %328 = dma.done.wait [#allocation7], 1024  }
  0x26   :  { %329 = vsyncadd [#allocation7], 4294966272  ;;  %v336_v0 = vmov 0.0   ;;  %vm337_vm0 = vmmov 0   ;;  %v251_v1 = vld [vmem:[#allocation6] sm:$0xff]   ;;  %v252_v2 = vld [vmem:[#allocation6 + $0x8] sm:$0xff]  }
  0x27   :  { %222 = vmatprep.subr.bf16.mxu0 %v336_v0  ;;  %238 = vmatprep.mubr.msk.bf16.mxu0 %vm337_vm0, %v336_v0  ;;  %v253_v3 = vld [vmem:[#allocation6 + $0x10] sm:$0xff]   ;;  %v254_v4 = vld [vmem:[#allocation6 + $0x18] sm:$0xff]   ;;  %v255_v5 = vld [vmem:[#allocation6 + $0x20] sm:$0xff]   ;;  %s338_s11 = smov [#allocation8]  }
  0x28   :  { %223 = vmatpush3.bf16.msra.mxu0 %v251_v1  ;;  %v256_v6 = vld [vmem:[#allocation6 + $0x28] sm:$0xff]   ;;  %v257_v7 = vld [vmem:[#allocation6 + $0x30] sm:$0xff]   ;;  %v258_v8 = vld [vmem:[#allocation6 + $0x38] sm:$0xff]   ;;  %s190_s12 = sshll.u32 %s338_s11, 4  ;;  %s191_s12 = int_to_ptr.vmem [resolvable:$true] %s190_s12 }
  0x29   :  { %224 = vmatprep.subr.bf16.mxu0 %v336_v0  ;;  %v259_v9 = vld [vmem:[#allocation3] sm:$0xff]   ;;  %s304_s13 = scalar_lea.vmem %s191_s12, 256  ;;  %p309_p3 = scmp.lt.s32.totalorder %s191_s12, %s191_s12 }
  0x2a   :  { %v212_v10 = vld [vmem:[%s402_s2] ss:$0 sm:$0xff]  ;;  %p305_p2 = scmp.ne.s32.totalorder %s191_s12, %s304_s13  ;;  %p310_p4 = scmp.lt.s32.totalorder %s304_s13, %s304_s13 }
  0x2c   :  { %225 = vmatpush3.bf16.msra.mxu0 %v252_v2  ;;  %p311_p5 = por %p310_p4, %p309_p3 }
  0x2d   :  { %226 = vmatprep.subr.bf16.mxu0 %v336_v0 }
  0x2e   :  { %p312_p6 = pnand %p311_p5, %p305_p2 }
  0x30   :  { %227 = vmatpush3.bf16.msra.mxu0 %v253_v3 }
  0x31   :  { %228 = vmatprep.subr.bf16.mxu0 %v336_v0 }
  0x34   :  { %229 = vmatpush3.bf16.msra.mxu0 %v254_v4 }
  0x35   :  { %230 = vmatprep.subr.bf16.mxu0 %v336_v0 }
  0x38   :  { %231 = vmatpush3.bf16.msra.mxu0 %v255_v5 }
  0x39   :  { %232 = vmatprep.subr.bf16.mxu0 %v336_v0 }
  0x3c   :  { %233 = vmatpush3.bf16.msra.mxu0 %v256_v6 }
  0x3d   :  { %234 = vmatprep.subr.bf16.mxu0 %v336_v0 }
  0x40   :  { %235 = vmatpush3.bf16.msra.mxu0 %v257_v7 }
  0x41   :  { %236 = vmatprep.subr.bf16.mxu0 %v336_v0 }
  0x44   :  { %237 = vmatpush3.bf16.msra.mxu0 %v258_v8 }
  0x47   :  { %239 = vmatmul.mubr.bf16.vlgmr.msra.gmra.mrb[0].mxu0 %v259_v9 }
 0x11a   :  { %v158_v11 = vpop.f32.mrb[0].mxu0 }
 0x11b   :  { %v181_v12 = vadd.f32 %v212_v10, %v158_v11  ;;  %v240_v13 = vpop.f32.mrb[1].mxu0 }
 0x11c   :  { %v161_v14 = vpop.f32.mrb[2].mxu0 }
 0x11d   :  { %183 = vst [vmem:[#allocation8] sm:$0xff] %v181_v12  ;;  %v182_v15 = vadd.f32 %v212_v10, %v161_v14  ;;  %v241_v16 = vpop.f32.mrb[3].mxu0 }
 0x11f   :  { %184 = vst [vmem:[#allocation8 + $0x8] sm:$0xff] %v182_v15 }
 0x120   :  { %315 = shalt.err (!%p312_p6)
}
 0x121   :  { %s316_s15 = scalar_lea.hbm %s403_s3, 256 }
 0x122   :  { %p317_p7 = scmp.ne.s32.totalorder %s403_s3, %s316_s15  ;;  %p320_p8 = scmp.lt.u32.totalorder %s316_s15, %s403_s3 }
 0x124   :  { %p322_p9 = pnand %p320_p8, %p317_p7 }
 0x126   :  { %325 = shalt.err (!%p322_p9)
}
 0x127   :  { %s339_s20 = smov 128   ;;  %s340_s21 = smov 8  }
 0x128   :  { %196 = dma.vmem_to_hbm [thread:$0]  %s191_s12, 256, %s403_s3, [#allocation5], %s339_s20, %s339_s20, %s340_s21  }
 0x129   :  { %330 = dma.done.wait [#allocation5], 256  }
 0x12a   :  { %331 = vsyncadd [#allocation5], 4294967040 }
 0x12b   :  { %200 = vsyncpa [#allocation4], 1 }
 0x12c   :  { %201 = vsyncpa [#allocation7], 1 }
 0x12d   :  { %202 = vsyncpa [#allocation5], 1 }

</bundles_post_ra>
